<compile_context>
chip_gen: v6e
topology: v6e:2x2x1
jax: 0.10.0
libtpu: 0.0.40
codegen_flags: <defaults>
</compile_context>

<pallas_src>
import functools

import jax
import jax.numpy as jnp
from jax.experimental import pallas as pl
from jax.experimental.pallas import tpu as pltpu

EXPAND_FACTOR = 16.0

# Small test shapes consistent with the module's structure
# (production: D_IN=4096, D_HID=65536, batch = training batch).
D_IN = 128
D_HID = int(EXPAND_FACTOR * D_IN)   # 2048
BATCH = 8


# ------------------------------------------------------------------
# Fused kernel: per k-step over the hidden (H) axis
#   f   = relu(x_blk @ W1[:, k-panel] + b1[k-panel])      (f32)
#   acc += f @ W2[k-panel, :]                             (f32 accumulator)
# features panel is written every step; x_hat on the last step.
# ------------------------------------------------------------------
def sae_fused_kernel(x_ref, w1_ref, b1_ref, w2_ref, b2_ref,
                     xhat_ref, f_ref, acc_ref):
    k = pl.program_id(1)

    @pl.when(k == 0)
    def _init():
        acc_ref[...] = jnp.zeros_like(acc_ref)

    # Encoder panel.  x is already in the weight dtype (cast once in the
    # wrapper); accumulation stays f32 via preferred_element_type.
    z = jnp.dot(x_ref[...], w1_ref[...], preferred_element_type=jnp.float32)
    f = jnp.maximum(z + b1_ref[...].astype(jnp.float32), 0.0)

    # Single cast: the same value is stored as `features` and fed to the
    # decoder (when feature_dtype == w2.dtype the second astype is a no-op,
    # so x_hat == fc2(features) bit-exactly).
    fb = f.astype(f_ref.dtype)
    f_ref[...] = fb

    acc_ref[...] += jnp.dot(fb.astype(w2_ref.dtype), w2_ref[...],
                            preferred_element_type=jnp.float32)

    @pl.when(k == pl.num_programs(1) - 1)
    def _finish():
        xhat_ref[...] = (acc_ref[...]
                         + b2_ref[...].astype(jnp.float32)).astype(xhat_ref.dtype)


# ------------------------------------------------------------------
# VMEM capacity query (per-TensorCore) with a safe fallback.
# ------------------------------------------------------------------
@functools.lru_cache(maxsize=1)
def _vmem_capacity_bytes():
    try:
        return int(pltpu.get_tpu_info().vmem_capacity_bytes)
    except Exception:
        return 64 << 20   # conservative (v7x per-TC VMEM)


# ------------------------------------------------------------------
# Tile selection: tm (batch tile) first — it controls weight re-streaming —
# then the largest hidden-dim panel tk that fits the VMEM budget.
# ------------------------------------------------------------------
def _select_tiles(M, D, H, x_bytes, w_bytes, f_bytes, o_bytes, budget,
                  min_m_blocks):
    tm_cands = {c for c in (1024, 512, 256, 128, 64, 32, 16, 8) if M % c == 0}
    if M <= 1024:
        tm_cands.add(M)                      # full-dim block is always legal
    tm_cands = sorted(tm_cands, reverse=True) or [M]

    tk_cands = [c for c in (8192, 4096, 2048, 1024, 512, 256, 128) if H % c == 0]
    tk_cands = tk_cands or [H]

    def fits(tm, tk):
        # x block (double-buffered) + f32 accumulator + x_hat block (dbuf) + b2
        fixed = tm * D * (2 * x_bytes + 4 + 2 * o_bytes) + 2 * D * 4 + (1 << 20)
        # W1 + W2 panels (dbuf) + features block (dbuf) + b1 panel (dbuf)
        per_k = 4 * D * tk * w_bytes + 2 * tm * tk * f_bytes + 2 * tk * 4
        return fixed + per_k <= budget

    # Pass 1 honors min_m_blocks (keep both v7x TensorCores busy); pass 2
    # relaxes it if nothing fits.
    for want_blocks in (min_m_blocks, 1):
        for tm in tm_cands:
            if M // tm < want_blocks:
                continue
            for tk in tk_cands:
                if fits(tm, tk):
                    return tm, tk
    return tm_cands[-1], tk_cands[-1]


# ------------------------------------------------------------------
# Wrapper: dtype handling, tile selection, pallas_call.
# ------------------------------------------------------------------
@functools.partial(
    jax.jit,
    static_argnames=("tm", "tk", "vmem_budget_mb", "feature_dtype",
                     "out_dtype", "min_m_blocks"))
def sae_forward(x, w1, b1, w2, b2, *, tm=None, tk=None, vmem_budget_mb=None,
                feature_dtype=None, out_dtype=None, min_m_blocks=1):
    M, D = x.shape
    Dw, H = w1.shape
    assert Dw == D, f"w1 shape {w1.shape} incompatible with x {x.shape}"
    assert w2.shape == (H, D), f"w2 shape {w2.shape} != {(H, D)}"
    assert b1.shape == (1, H) and b2.shape == (1, D)

    out_dtype = jnp.dtype(out_dtype) if out_dtype is not None else jnp.dtype(x.dtype)
    # features default to the weight dtype (bf16 in production -> halves the
    # (M, H) HBM write and the (tm, tk) VMEM output buffers).
    feature_dtype = (jnp.dtype(feature_dtype) if feature_dtype is not None
                     else jnp.dtype(w1.dtype))

    # Cast x to the weight dtype ONCE here (not per k-step inside the kernel).
    x = x.astype(w1.dtype)

    x_bytes = jnp.dtype(x.dtype).itemsize
    w_bytes = jnp.dtype(w1.dtype).itemsize
    f_bytes = feature_dtype.itemsize
    o_bytes = out_dtype.itemsize

    # ---- VMEM budget / limit: leave headroom below physical VMEM ----
    if vmem_budget_mb is not None:
        budget = int(vmem_budget_mb) << 20
    else:
        cap = _vmem_capacity_bytes()
        # ~52 MiB budget on v7x (64 MiB/TC), ~112 MiB on v5e/v6e (128 MiB).
        budget = max(min(cap - (12 << 20), 112 << 20), 32 << 20)
    vmem_limit = min(budget + (4 << 20), 120 << 20)

    # ---- tile selection (tm first, then tk) ----
    tm_sel, tk_sel = _select_tiles(M, D, H, x_bytes, w_bytes, f_bytes, o_bytes,
                                   budget, min_m_blocks)
    tm = tm_sel if tm is None else tm
    tk = tk_sel if tk is None else tk
    assert M % tm == 0, f"batch {M} not divisible by tm={tm}"
    assert H % tk == 0, f"hidden dim {H} not divisible by tk={tk}"
    assert tm == M or tm % 8 == 0, f"tm={tm} violates (8,128) block constraint"

    grid = (M // tm, H // tk)

    # TODO(synk): optional fp8 weight storage with per-row scales (v7x MXU)
    # would halve weight HBM traffic again; kept out pending a quality check.

    x_hat, features = pl.pallas_call(
        sae_fused_kernel,
        out_shape=(jax.ShapeDtypeStruct((M, D), out_dtype),
                   jax.ShapeDtypeStruct((M, H), feature_dtype)),
        grid_spec=pltpu.PrefetchScalarGridSpec(
            num_scalar_prefetch=0,
            grid=grid,
            in_specs=[
                pl.BlockSpec((tm, D), lambda i, k: (i, 0)),   # x (resident over k)
                pl.BlockSpec((D, tk), lambda i, k: (0, k)),   # W1 panel
                pl.BlockSpec((1, tk), lambda i, k: (0, k)),   # b1 panel
                pl.BlockSpec((tk, D), lambda i, k: (k, 0)),   # W2 panel
                pl.BlockSpec((1, D), lambda i, k: (0, 0)),    # b2
            ],
            out_specs=[
                pl.BlockSpec((tm, D), lambda i, k: (i, 0)),   # x_hat (accumulated)
                pl.BlockSpec((tm, tk), lambda i, k: (i, k)),  # features
            ],
            scratch_shapes=[pltpu.VMEM((tm, D), jnp.float32)],
        ),
        compiler_params=pltpu.CompilerParams(
            # M axis "parallel" -> both v7x TensorCores used when M//tm >= 2;
            # H is the reduction axis, must be "arbitrary".
            dimension_semantics=("parallel", "arbitrary"),
            vmem_limit_bytes=vmem_limit,
        ),
    )(x, w1, b1, w2, b2)
    return x_hat, features


def init_sae_params(key, d_in, d_hid, weight_dtype=jnp.float32):
    # Mirrors SAE.initialize_weights():
    #   W_d = randn(d_in, d_hid); W_d /= ||W_d||_row; W_d *= 0.1
    #   fc2.weight = W_d  (so W2 = W_d.T), fc1.weight = W_d.T (so W1 = W_d)
    #   biases zero.
    w_d = jax.random.normal(key, (d_in, d_hid), dtype=jnp.float32)
    w_d = w_d / jnp.linalg.norm(w_d, axis=1, keepdims=True) * 0.1
    w1 = w_d.astype(weight_dtype)                 # (D, H)
    w2 = jnp.transpose(w_d).astype(weight_dtype)  # (H, D)
    b1 = jnp.zeros((1, d_hid), dtype=jnp.float32)
    b2 = jnp.zeros((1, d_in), dtype=jnp.float32)
    return w1, b1, w2, b2


if __name__ == "__main__":
    key = jax.random.PRNGKey(0)
    kx, kw = jax.random.split(key)

    x = jax.random.normal(kx, (BATCH, D_IN), dtype=jnp.float32)
    w1, b1, w2, b2 = init_sae_params(kw, D_IN, D_HID)

    # ---- f32 weights, forced multi-step reduction over H (tk=512 -> 4 steps) ----
    x_hat, features = sae_forward(x, w1, b1, w2, b2, tk=512)
    jax.block_until_ready((x_hat, features))

    f_ref = jnp.maximum(x @ w1 + b1, 0.0)
    xh_ref = f_ref @ w2 + b2
    assert x_hat.shape == (BATCH, D_IN) and features.shape == (BATCH, D_HID)
    assert jnp.allclose(features, f_ref, atol=2e-3, rtol=2e-2), "features mismatch (f32)"
    assert jnp.allclose(x_hat, xh_ref, atol=2e-4, rtol=2e-2), "x_hat mismatch (f32)"

    # ---- bf16 weights (production config), automatic tm/tk from VMEM budget;
    #      features default to bf16 (same dtype as weights). ----
    w1b = w1.astype(jnp.bfloat16)
    w2b = w2.astype(jnp.bfloat16)
    x_hat_b, features_b = sae_forward(x, w1b, b1, w2b, b2)
    jax.block_until_ready((x_hat_b, features_b))

    xb32 = x.astype(jnp.bfloat16).astype(jnp.float32)
    f_ref_b = jnp.maximum(xb32 @ w1b.astype(jnp.float32) + b1, 0.0)
    xh_ref_b = (f_ref_b.astype(jnp.bfloat16).astype(jnp.float32)
                @ w2b.astype(jnp.float32) + b2)
    assert features_b.dtype == jnp.bfloat16
    assert jnp.allclose(features_b.astype(jnp.float32), f_ref_b,
                        atol=1e-3, rtol=3e-2), "features mismatch (bf16)"
    assert jnp.allclose(x_hat_b, xh_ref_b, atol=2e-4, rtol=5e-2), "x_hat mismatch (bf16)"

    print("KERNEL_OK")
</pallas_src>

<mosaic_0001>
module attributes {stable_mosaic.version = 11 : i64} {
  func.func @sae_fused_kernel(%arg0: i32, %arg1: i32, %arg2: memref<8x128xf32, #tpu.memory_space<vmem>>, %arg3: memref<128x512xf32, #tpu.memory_space<vmem>>, %arg4: memref<1x512xf32, #tpu.memory_space<vmem>>, %arg5: memref<512x128xf32, #tpu.memory_space<vmem>>, %arg6: memref<1x128xf32, #tpu.memory_space<vmem>>, %arg7: memref<8x128xf32, #tpu.memory_space<vmem>>, %arg8: memref<8x512xf32, #tpu.memory_space<vmem>>, %arg9: memref<8x128xf32, #tpu.memory_space<vmem>>) attributes {dimension_semantics = [#tpu.dimension_semantics<parallel>, #tpu.dimension_semantics<arbitrary>], iteration_bounds = array<i64: 1, 4>, scalar_prefetch = 0 : i64, scratch_operands = 1 : i64, tpu.core_type = #tpu.core_type<tc>, window_params = [{transform_indices = @transform_0, window_bounds = array<i64: 8, 128>}, {transform_indices = @transform_1, window_bounds = array<i64: 128, 512>}, {transform_indices = @transform_2, window_bounds = array<i64: 1, 512>}, {transform_indices = @transform_3, window_bounds = array<i64: 512, 128>}, {pipeline_mode = #tpu.pipeline_mode<synchronous>, transform_indices = @transform_4, window_bounds = array<i64: 1, 128>}, {transform_indices = @transform_5, window_bounds = array<i64: 8, 128>}, {transform_indices = @transform_6, window_bounds = array<i64: 8, 512>}]} {
    %c0_i32 = arith.constant 0 : i32
    %0 = arith.cmpi eq, %arg1, %c0_i32 : i32
    %1 = arith.extui %0 : i1 to i32
    %c0_i32_0 = arith.constant 0 : i32
    %2 = arith.cmpi ne, %1, %c0_i32_0 : i32
    scf.if %2 {
      %cst_17 = arith.constant 0.000000e+00 : f32
      %20 = vector.broadcast %cst_17 : f32 to vector<8x128xf32>
      %c0_18 = arith.constant 0 : index
      %c0_19 = arith.constant 0 : index
      %21 = vector.load %arg9[%c0_18, %c0_19] : memref<8x128xf32, #tpu.memory_space<vmem>>, vector<8x128xf32>
      tpu.vector_store %arg9[%c0_18, %c0_19], %20 {strides = array<i32>} : memref<8x128xf32, #tpu.memory_space<vmem>>, vector<8x128xf32>,
    } else {
    }
    %c0 = arith.constant 0 : index
    %c0_1 = arith.constant 0 : index
    %3 = vector.load %arg2[%c0, %c0_1] : memref<8x128xf32, #tpu.memory_space<vmem>>, vector<8x128xf32>
    %c0_2 = arith.constant 0 : index
    %c0_3 = arith.constant 0 : index
    %4 = vector.load %arg3[%c0_2, %c0_3] : memref<128x512xf32, #tpu.memory_space<vmem>>, vector<128x512xf32>
    %cst = arith.constant dense<0.000000e+00> : vector<8x512xf32>
    %5 = tpu.matmul %3, %4, %cst {dimension_numbers = #tpu.dot_dimension_numbers<[1], [0], [0], [1], [0, 0, 1, 1], [], []>} : vector<8x128xf32>, vector<128x512xf32>, vector<8x512xf32> -> vector<8x512xf32>
    %c0_4 = arith.constant 0 : index
    %c0_5 = arith.constant 0 : index
    %6 = vector.load %arg4[%c0_4, %c0_5] : memref<1x512xf32, #tpu.memory_space<vmem>>, vector<1x512xf32>
    %7 = vector.broadcast %6 : vector<1x512xf32> to vector<8x512xf32>
    %8 = arith.addf %5, %7 : vector<8x512xf32>
    %cst_6 = arith.constant 0.000000e+00 : f32
    %9 = vector.broadcast %cst_6 : f32 to vector<8x512xf32>
    %10 = arith.maximumf %8, %9 : vector<8x512xf32>
    %c0_7 = arith.constant 0 : index
    %c0_8 = arith.constant 0 : index
    %11 = vector.load %arg8[%c0_7, %c0_8] : memref<8x512xf32, #tpu.memory_space<vmem>>, vector<8x512xf32>
    tpu.vector_store %arg8[%c0_7, %c0_8], %10 {strides = array<i32>} : memref<8x512xf32, #tpu.memory_space<vmem>>, vector<8x512xf32>,
    %c0_9 = arith.constant 0 : index
    %c0_10 = arith.constant 0 : index
    %12 = vector.load %arg9[%c0_9, %c0_10] : memref<8x128xf32, #tpu.memory_space<vmem>>, vector<8x128xf32>
    %c0_11 = arith.constant 0 : index
    %c0_12 = arith.constant 0 : index
    %13 = vector.load %arg5[%c0_11, %c0_12] : memref<512x128xf32, #tpu.memory_space<vmem>>, vector<512x128xf32>
    %cst_13 = arith.constant dense<0.000000e+00> : vector<8x128xf32>
    %14 = tpu.matmul %10, %13, %cst_13 {dimension_numbers = #tpu.dot_dimension_numbers<[1], [0], [0], [1], [0, 0, 1, 1], [], []>} : vector<8x512xf32>, vector<512x128xf32>, vector<8x128xf32> -> vector<8x128xf32>
    %15 = arith.addf %12, %14 : vector<8x128xf32>
    %c0_14 = arith.constant 0 : index
    %c0_15 = arith.constant 0 : index
    %16 = vector.load %arg9[%c0_14, %c0_15] : memref<8x128xf32, #tpu.memory_space<vmem>>, vector<8x128xf32>
    tpu.vector_store %arg9[%c0_14, %c0_15], %15 {strides = array<i32>} : memref<8x128xf32, #tpu.memory_space<vmem>>, vector<8x128xf32>,
    %c3_i32 = arith.constant 3 : i32
    %17 = arith.cmpi eq, %arg1, %c3_i32 : i32
    %18 = arith.extui %17 : i1 to i32
    %c0_i32_16 = arith.constant 0 : i32
    %19 = arith.cmpi ne, %18, %c0_i32_16 : i32
    scf.if %19 {
      %c0_17 = arith.constant 0 : index
      %c0_18 = arith.constant 0 : index
      %20 = vector.load %arg9[%c0_17, %c0_18] : memref<8x128xf32, #tpu.memory_space<vmem>>, vector<8x128xf32>
      %c0_19 = arith.constant 0 : index
      %c0_20 = arith.constant 0 : index
      %21 = vector.load %arg6[%c0_19, %c0_20] : memref<1x128xf32, #tpu.memory_space<vmem>>, vector<1x128xf32>
      %22 = vector.broadcast %21 : vector<1x128xf32> to vector<8x128xf32>
      %23 = arith.addf %20, %22 : vector<8x128xf32>
      %c0_21 = arith.constant 0 : index
      %c0_22 = arith.constant 0 : index
      %24 = vector.load %arg7[%c0_21, %c0_22] : memref<8x128xf32, #tpu.memory_space<vmem>>, vector<8x128xf32>
      tpu.vector_store %arg7[%c0_21, %c0_22], %23 {strides = array<i32>} : memref<8x128xf32, #tpu.memory_space<vmem>>, vector<8x128xf32>,
    } else {
    }
    return
  }
  func.func @transform_0(%arg0: i32, %arg1: i32) -> (i32, i32) {
    %c0_i32 = arith.constant 0 : i32
    %c0_i32_0 = arith.constant 0 : i32
    return %arg0, %c0_i32 : i32, i32
  }
  func.func @transform_1(%arg0: i32, %arg1: i32) -> (i32, i32) {
    %c0_i32 = arith.constant 0 : i32
    %c0_i32_0 = arith.constant 0 : i32
    return %c0_i32, %arg1 : i32, i32
  }
  func.func @transform_2(%arg0: i32, %arg1: i32) -> (i32, i32) {
    %c0_i32 = arith.constant 0 : i32
    %c0_i32_0 = arith.constant 0 : i32
    return %c0_i32, %arg1 : i32, i32
  }
  func.func @transform_3(%arg0: i32, %arg1: i32) -> (i32, i32) {
    %c0_i32 = arith.constant 0 : i32
    %c0_i32_0 = arith.constant 0 : i32
    return %arg1, %c0_i32 : i32, i32
  }
  func.func @transform_4(%arg0: i32, %arg1: i32) -> (i32, i32) {
    %c0_i32 = arith.constant 0 : i32
    %c0_i32_0 = arith.constant 0 : i32
    %c0_i32_1 = arith.constant 0 : i32
    return %c0_i32, %c0_i32_0 : i32, i32
  }
  func.func @transform_5(%arg0: i32, %arg1: i32) -> (i32, i32) {
    %c0_i32 = arith.constant 0 : i32
    %c0_i32_0 = arith.constant 0 : i32
    return %arg0, %c0_i32 : i32, i32
  }
  func.func @transform_6(%arg0: i32, %arg1: i32) -> (i32, i32) {
    %c0_i32 = arith.constant 0 : i32
    return %arg0, %arg1 : i32, i32
  }
}

</mosaic_0001>

<bundles_post_ra>
// kernel: sae_forward.1
= control target key start
LH: loop header
LB: loop body
LE: loop exit
PB: predicated region body
PF: predicated region fallthrough
CT: control target
= control target key end

     0   :  { %s1878_s0 = inlined_call_operand.hbm [shape: f32[8,128], index: 0, kind: input, shape index: {}]   ;;  %s1879_s1 = inlined_call_operand.hbm [shape: f32[128,2048], index: 1, kind: input, shape index: {}]   ;;  %s1880_s2 = inlined_call_operand.hbm [shape: f32[1,2048], index: 2, kind: input, shape index: {}]   ;;  %s1881_s3 = inlined_call_operand.hbm [shape: f32[2048,128], index: 3, kind: input, shape index: {}]   ;;  %s1882_s4 = inlined_call_operand.vmem [shape: f32[1,128], index: 4, kind: input, shape index: {}]   ;;  %s1883_s5 = inlined_call_operand.hbm [shape: f32[8,128], index: 5, kind: output, shape index: {0}]   ;;  %s1884_s6 = inlined_call_operand.hbm [shape: f32[8,2048], index: 6, kind: output, shape index: {1}]  }
   0x1   :  { %1894 = sst [smem:[#allocation23_spill]] %s1879_s1 }
   0x2   :  { %12 = vsyncpa [#allocation4], 0 }
   0x3   :  { %13 = vsyncpa [#allocation7], 0 }
   0x4   :  { %15 = vsyncpa [#allocation7 + $0x1], 0 }
   0x5   :  { %16 = vsyncpa [#allocation10], 0 }
   0x6   :  { %18 = vsyncpa [#allocation10 + $0x1], 0 }
   0x7   :  { %19 = vsyncpa [#allocation5], 0 }
   0x8   :  { %20 = vsyncpa [#allocation13], 0 }
   0x9   :  { %22 = vsyncpa [#allocation13 + $0x1], 0  ;;  %s1510_s21 = smov 0   ;;  %s1512_s22 = smov 0  }
   0xa   :  { %s1514_s23 = smov 0   ;;  %s1516_s24 = smov 0  }
   0xb   :  { %s1518_s25 = smov 0   ;;  %s1520_s26 = smov 0  }
   0xc LB: > { %1895 = sst [smem:[#allocation19_spill]] %s1448_s23  ;;  %s37_s27 = sadd.s32 1, %s1456_s25  ;;  %s1460_s26 = sphi %s1520_s26, %s28_s26   ;;  %s1456_s25 = sphi %s1518_s25, %s1924_s25   ;;  %s1452_s24 = sphi %s1516_s24, %s1923_s24   ;;  %s1448_s23 = sphi %s1514_s23, %s1919_s23   ;;  %s1444_s22 = sphi %s1512_s22, %s1922_s22   ;;  %s1440_s21 = sphi %s1510_s21, %s1921_s21  }
   0xd   : > { %s73_s28 = sadd.s32 1, %s1448_s23  ;;  %p38_p0 = scmp.ge.s32.totalorder %s37_s27, 4 }
   0xe   : > { %p80_p1 = scmp.ne.s32.totalorder %s1448_s23, %s1444_s22  ;;  %p81_p2 = scmp.eq.s32.totalorder %s1460_s26, 0 }
   0xf   : > { %s1926_s27 = smov (%p38_p0, %s37_s27), 0  ;;  %p1172_p4 = scmp.lt.s32.totalorder %s1460_s26, 4 }
  0x10   : > { %1896 = sst [smem:[#allocation20_spill]] %s1926_s27  ;;  %p82_p3 = por %p81_p2, %p80_p1 }
  0x11   : > { %s70_s29 = ssub.s32 %s1456_s25, %s1926_s27  ;;  %s253_s30 = sand.u32 1, %s1460_s26  }
  0x12   : > { %p71_p5 = scmp.eq.s32.totalorder %s70_s29, 0  ;;  %s1555_s7 = sand.u32 1, %s1448_s23  }
  0x13   : > { %s1063_s8 = sshll.u32 %s1456_s25, 9  ;;  %s1885_s10 = sshll.u32 %s1555_s7, 9 }
  0x14   : > { %s1559_s9 = scalar_select %p71_p5, %s1448_s23, %s73_s28  }
  0x15   : > { %s1898_s1 = sld [smem:[#allocation23_spill]]  ;;  %p1565_p6 = pnand %p1172_p4, %p82_p3 }
  0x16   : > { %1897 = sst [smem:[#allocation21_spill]] %s1559_s9  ;;  %s257_s15 = scalar_lea.vmem [#allocation6], %s1885_s10 }
  0x17   : > { %s264_s16 = sshll.u32 %s257_s15, 4  ;;  %s1571_s17 = scalar_lea.sflag [#allocation7], %s253_s30  ;;  %s265_s16 = int_to_ptr.vmem [resolvable:$true] %s264_s16 }
  0x18   : > { %p1892_p7 = pneg %p1565_p6  ;;  %s1247_s18 = scalar_lea.vmem %s265_s16, 8192 }
  0x19   : > { %p1248_p8 = scmp.ne.s32.totalorder %s265_s16, %s1247_s18  ;;  %s1462_s19 = smov [#allocation6]  }
  0x1a   : > { %s1252_s20 = sshll.u32 %s1462_s19, 4  ;;  %s1253_s20 = int_to_ptr.vmem [resolvable:$false] %s1252_s20 }
  0x1b   : > { %s263_s13 = scalar_lea.hbm %s1898_s1, %s1063_s8  ;;  %p1250_p9 = pnand %p1248_p8, %p1892_p7 }
  0x1c   : > { %s1254_s28 = scalar_lea.vmem %s1253_s20, 16384  ;;  %p1255_p11 = scmp.lt.s32.totalorder %s265_s16, %s1253_s20 }
  0x1d   : > { %p1251_p10 = pneg %p1250_p9  ;;  %p1256_p12 = scmp.lt.s32.totalorder %s1254_s28, %s1247_s18 }
  0x1f   : > { %p1257_p13 = por %p1256_p12, %p1255_p11 }
  0x21   : > { %p1258_p0 = pnand %p1257_p13, %p1251_p10 }
  0x23   : > { %1261 = shalt.err (!%p1258_p0)
}
  0x24   : > { %s1463_s29 = smov 2048   ;;  %s1464_s30 = smov 512  }
  0x25   : > { %s1465_s8 = smov 32   ;;  %s1582_s11 = sadd.s32 4294967295, %s1460_s26  }
  0x26   : > { %1160 = dma.hbm_to_vmem [thread:$0]  (!%p1565_p6), %s263_s13, 8192, %s265_s16, %s1571_s17, %s1463_s29, %s1464_s30, %s1465_s8  }
  0x27   : > { %s1034_s12 = sadd.s32 4294967294, %s1460_s26   ;;  %p86_p2 = scmp.ne.s32.totalorder %s1444_s22, %s1440_s21 }
  0x28   : > { %p1891_p3 = scmp.eq.s32.totalorder %s1582_s11, 0  ;;  %p1889_p4 = scmp.eq.s32.totalorder %s1582_s11, 3 }
  0x29   : > { %p217_p5 = scmp.eq.s32.totalorder %s1034_s12, 3  ;;  %p1035_p9 = scmp.ge.s32.totalorder %s1460_s26, 1 }
  0x2a   : > { %p1591_p8 = por %p1891_p3, %p86_p2  ;;  %p1601_p10 = por %p1889_p4, %p80_p1 }
  0x2b   : > { %p1605_p11 = por %p217_p5, %p86_p2  ;;  %p224_p12 = scmp.lt.s32.totalorder %s1460_s26, 5 }
  0x2c   : > { %s1900_s15 = scalar_select %p1591_p8, 1, 0 }
  0x2d   : > { %s1901_s13 = scalar_select %p1601_p10, 1, 0 }
  0x2e   : > { %s1902_s16 = scalar_select %p1605_p11, 1, 0 }
  0x2f   : > { %s1041_s18 = sshll.u32 %s1555_s7, 2  ;;  %p1611_p13 = pnand %p1035_p9, %p224_p12 }
  0x30   : > { %1903 = sst [smem:[#allocation22_spill]] %s1902_s16  ;;  %s1466_s20 = smov [#allocation3]  }
  0x31   : > { %s239_s28 = sshll.u32 %s1466_s20, 4  ;;  %p1153_p1 = pneg %p1611_p13  ;;  %s1615_s28 = int_to_ptr.vmem [resolvable:$true] %s239_s28 }
  0x32   : > { %s1064_s29 = sshll.u32 %s1456_s25, 6  ;;  %s278_s10 = scalar_lea.vmem [#allocation8], %s1041_s18 }
  0x33   : > { %s284_s12 = scalar_lea.hbm %s1880_s2, %s1064_s29  ;;  %s286_s1 = sshll.u32 %s278_s10, 4  ;;  %s287_s1 = int_to_ptr.vmem [resolvable:$true] %s286_s1 }
  0x34   : > { %p1625_p0 = pnand %p1153_p1, %p1891_p3  ;;  %s1275_s9 = scalar_lea.vmem %s287_s1, 64 }
  0x35   : > { %p1276_p2 = scmp.ne.s32.totalorder %s287_s1, %s1275_s9  ;;  %s1467_s20 = smov [#allocation8]  }
  0x36   : > { %s1280_s23 = sshll.u32 %s1467_s20, 4  ;;  %s1281_s23 = int_to_ptr.vmem [resolvable:$false] %s1280_s23 }
  0x37   : > { %p1278_p5 = pnand %p1276_p2, %p1892_p7  ;;  %s1282_s16 = scalar_lea.vmem %s1281_s23, 128 }
  0x38   : > { %p1283_p12 = scmp.lt.s32.totalorder %s287_s1, %s1281_s23  ;;  %p1284_p4 = scmp.lt.s32.totalorder %s1282_s16, %s1275_s9 }
  0x39   : > { %p1279_p9 = pneg %p1278_p5 }
  0x3a   : > { %p1285_p11 = por %p1284_p4, %p1283_p12 }
  0x3c   : > { %p1286_p10 = pnand %p1285_p11, %p1279_p9 }
  0x3e   : > { %1289 = shalt.err (!%p1286_p10)
}
  0x3f   : > { %1163 = dma.hbm_to_vmem [thread:$0]  (!%p1565_p6), %s284_s12, 64, %s287_s1, %s1571_s17  }
  0x40   : > { %p1292_p1 = pneg %p1625_p0  ;;  %s1301_s10 = scalar_lea.vmem %s1615_s28, 128 }
  0x41   : > { %p1302_p2 = scmp.ne.s32.totalorder %s1615_s28, %s1301_s10  ;;  %p1309_p7 = scmp.lt.s32.totalorder %s1615_s28, %s1615_s28 }
  0x42   : > { %p1310_p8 = scmp.lt.s32.totalorder %s1301_s10, %s1301_s10 }
  0x43   : > { %p1304_p5 = pnand %p1302_p2, %p1292_p1 }
  0x44   : > { %p1311_p4 = por %p1310_p8, %p1309_p7 }
  0x45   : > { %p1305_p3 = pneg %p1304_p5 }
  0x47   : > { %p1312_p11 = pnand %p1311_p4, %p1305_p3 }
  0x49   : > { %1315 = shalt.err (!%p1312_p11)
}
  0x4a   : > { %1156 = dma.hbm_to_vmem [thread:$0]  (!%p1625_p0), %s1878_s0, 128, %s1615_s28, [#allocation4]  }
  0x4b   : > { %s1065_s1 = sshll.u32 %s1456_s25, 13  ;;  %s1906_s29 = sshll.u32 %s1555_s7, 9 }
  0x4c   : > { %s303_s18 = scalar_lea.hbm %s1881_s3, %s1065_s1  ;;  %s297_s30 = scalar_lea.vmem [#allocation9], %s1906_s29 }
  0x4d   : > { %s304_s8 = sshll.u32 %s297_s30, 4  ;;  %s294_s12 = scalar_lea.sflag [#allocation10], %s1555_s7  ;;  %s305_s8 = int_to_ptr.vmem [resolvable:$true] %s304_s8 }
  0x4e   : > { %s1329_s27 = scalar_lea.vmem %s305_s8, 8192  ;;  %p1907_p3 = pneg %p1565_p6 }
  0x4f   : > { %p1330_p7 = scmp.ne.s32.totalorder %s305_s8, %s1329_s27  ;;  %s1468_s20 = smov [#allocation9]  }
  0x50   : > { %s1334_s10 = sshll.u32 %s1468_s20, 4  ;;  %s1335_s10 = int_to_ptr.vmem [resolvable:$false] %s1334_s10 }
  0x51   : > { %p1332_p8 = pnand %p1330_p7, %p1907_p3  ;;  %s1336_s28 = scalar_lea.vmem %s1335_s10, 16384 }
  0x52   : > { %p1337_p0 = scmp.lt.s32.totalorder %s305_s8, %s1335_s10  ;;  %p1338_p9 = scmp.lt.s32.totalorder %s1336_s28, %s1329_s27 }
  0x53   : > { %p1333_p10 = pneg %p1332_p8 }
  0x54   : > { %p1339_p12 = por %p1338_p9, %p1337_p0 }
  0x56   : > { %p1340_p1 = pnand %p1339_p12, %p1333_p10 }
  0x58   : > { %1343 = shalt.err (!%p1340_p1)
}
  0x59   : > { %s1469_s23 = smov 128   ;;  %s1470_s9 = smov 8  }
  0x5a   : > { %1166 = dma.hbm_to_vmem [thread:$0]  (!%p1565_p6), %s303_s18, 8192, %s305_s8, %s294_s12, %s1469_s23, %s1469_s23, %s1470_s9  }
  0x5b   : > { %316 = sbr.rel (%p1611_p13) target bundleno = 602 (0x25a), region = 40  ;;  %p1908_p2 = scmp.eq.s32.totalorder (!%p1611_p13), %s1582_s11, 0 }
  0x60   : > { %1419 = dma.done.wait (%p1908_p2), [#allocation4], 128   ;;  %p1909_p5 = pmov %p1908_p2 }
  0x61   : > { %s322_s7 = sand.u32 1, %s1582_s11   ;;  %s1667_s1 = sand.u32 1, %s1444_s22  }
  0x62   : > { %1421 = vsyncadd (%p1909_p5), [#allocation4], 4294967168  ;;  %s1049_s17 = sshll.u32 %s1667_s1, 9  ;;  %s323_s16 = scalar_lea.sflag [#allocation7], %s322_s7 }
  0x63   : > { %s1670_s14 = scalar_lea.vmem [#allocation6], %s1049_s17  ;;  %p1910_p6 = scmp.ne.s32.totalorder %s1900_s15, 0 }
  0x65   : > { %1423 = dma.done.wait (%p1910_p6), %s323_s16, 8256  }
  0x66   : > { %1425 = vsyncadd (%p1910_p6), %s323_s16, 4294959040  ;;  %s1050_s19 = sshll.u32 %s1667_s1, 2  ;;  %s341_s29 = scalar_lea.sflag [#allocation10], %s1667_s1 }
  0x67   : > { %s1677_s18 = scalar_lea.vmem [#allocation8], %s1050_s19  ;;  %s1680_s30 = scalar_lea.vmem [#allocation9], %s1049_s17 }
  0x68   : > { %1427 = dma.done.wait (%p1910_p6), %s341_s29, 8192  }
  0x69   : > { %1429 = vsyncadd (%p1910_p6), %s341_s29, 4294959104  ;;  %s1052_s8 = sshll.u32 %s1667_s1, 5  ;;  %p1053_p13 = scmp.ne.s32.totalorder %s1452_s24, 0 }
  0x6a   : > { %s1687_s12 = scalar_lea.vmem [#allocation12], %s1052_s8 }
  0x6b   : > { %390 = sbr.rel (%p1053_p13) target bundleno = 114 (0x72), region = 60 }
  0x70   : > { %v1471_v0 = vmov 0.0  }
  0x71   : > { %391 = vst [vmem:[#allocation2] sm:$0xff] %v1471_v0 }
  0x72 PF: > { %v454_v1 = vld [vmem:[%s1670_s14 + $0x1e8] sm:$0xff]  ;;  %v456_v2 = vld [vmem:[%s1670_s14 + $0x1f8] sm:$0xff]  ;;  %v453_v3 = vld [vmem:[%s1670_s14 + $0x1e0] sm:$0xff]  ;;  %p1054_p4 = scmp.ne.s32.totalorder %s1452_s24, 3 }
  0x73   : > { %479 = vmatprep.subr.mxu0 %v454_v1  ;;  %550 = vmatprep.subr.mxu1 %v456_v2  ;;  %v455_v4 = vld [vmem:[%s1670_s14 + $0x1f0] sm:$0xff]  ;;  %v450_v5 = vld [vmem:[%s1670_s14 + $0x1c8] sm:$0xff]  ;;  %v452_v6 = vld [vmem:[%s1670_s14 + $0x1d8] sm:$0xff]  ;;  %v1472_v2 = vmov 0.0  }
  0x74   : > { %480 = vmatpush1.msra.mxu0 %v453_v3  ;;  %551 = vmatpush1.msra.mxu1 %v455_v4  ;;  %v449_v7 = vld [vmem:[%s1670_s14 + $0x1c0] sm:$0xff]  ;;  %v451_v8 = vld [vmem:[%s1670_s14 + $0x1d0] sm:$0xff]  ;;  %v446_v9 = vld [vmem:[%s1670_s14 + $0x1a8] sm:$0xff] }
  0x75   : > { %481 = vmatprep.subr.mxu0 %v450_v5  ;;  %552 = vmatprep.subr.mxu1 %v452_v6  ;;  %v448_v10 = vld [vmem:[%s1670_s14 + $0x1b8] sm:$0xff]  ;;  %v445_v11 = vld [vmem:[%s1670_s14 + $0x1a0] sm:$0xff]  ;;  %v447_v12 = vld [vmem:[%s1670_s14 + $0x1b0] sm:$0xff] }
  0x76   : > { %482 = vmatpush1.msra.mxu0 %v449_v7  ;;  %553 = vmatpush1.msra.mxu1 %v451_v8  ;;  %v442_v13 = vld [vmem:[%s1670_s14 + $0x188] sm:$0xff]  ;;  %v444_v14 = vld [vmem:[%s1670_s14 + $0x198] sm:$0xff]  ;;  %v441_v15 = vld [vmem:[%s1670_s14 + $0x180] sm:$0xff] }
  0x77   : > { %483 = vmatprep.subr.mxu0 %v446_v9  ;;  %554 = vmatprep.subr.mxu1 %v448_v10  ;;  %v443_v16 = vld [vmem:[%s1670_s14 + $0x190] sm:$0xff]  ;;  %v438_v17 = vld [vmem:[%s1670_s14 + $0x168] sm:$0xff]  ;;  %v440_v18 = vld [vmem:[%s1670_s14 + $0x178] sm:$0xff] }
  0x78   : > { %484 = vmatpush1.msra.mxu0 %v445_v11  ;;  %555 = vmatpush1.msra.mxu1 %v447_v12  ;;  %v437_v19 = vld [vmem:[%s1670_s14 + $0x160] sm:$0xff]  ;;  %v439_v20 = vld [vmem:[%s1670_s14 + $0x170] sm:$0xff]  ;;  %v434_v21 = vld [vmem:[%s1670_s14 + $0x148] sm:$0xff] }
  0x79   : > { %485 = vmatprep.subr.mxu0 %v442_v13  ;;  %556 = vmatprep.subr.mxu1 %v444_v14  ;;  %v436_v22 = vld [vmem:[%s1670_s14 + $0x158] sm:$0xff]  ;;  %v433_v23 = vld [vmem:[%s1670_s14 + $0x140] sm:$0xff]  ;;  %v435_v24 = vld [vmem:[%s1670_s14 + $0x150] sm:$0xff] }
  0x7a   : > { %486 = vmatpush1.msra.mxu0 %v441_v15  ;;  %557 = vmatpush1.msra.mxu1 %v443_v16  ;;  %v430_v25 = vld [vmem:[%s1670_s14 + $0x128] sm:$0xff]  ;;  %v432_v26 = vld [vmem:[%s1670_s14 + $0x138] sm:$0xff]  ;;  %v429_v27 = vld [vmem:[%s1670_s14 + $0x120] sm:$0xff] }
  0x7b   : > { %487 = vmatprep.subr.mxu0 %v438_v17  ;;  %558 = vmatprep.subr.mxu1 %v440_v18  ;;  %v431_v28 = vld [vmem:[%s1670_s14 + $0x130] sm:$0xff]  ;;  %v426_v29 = vld [vmem:[%s1670_s14 + $0x108] sm:$0xff]  ;;  %v428_v30 = vld [vmem:[%s1670_s14 + $0x118] sm:$0xff] }
  0x7c   : > { %488 = vmatpush1.msra.mxu0 %v437_v19  ;;  %559 = vmatpush1.msra.mxu1 %v439_v20  ;;  %v425_v31 = vld [vmem:[%s1670_s14 + $0x100] sm:$0xff]  ;;  %v427_v32 = vld [vmem:[%s1670_s14 + $0x110] sm:$0xff]  ;;  %v422_v33 = vld [vmem:[%s1670_s14 + $0xe8] sm:$0xff] }
  0x7d   : > { %489 = vmatprep.subr.mxu0 %v434_v21  ;;  %560 = vmatprep.subr.mxu1 %v436_v22  ;;  %v424_v34 = vld [vmem:[%s1670_s14 + $0xf8] sm:$0xff]  ;;  %v421_v35 = vld [vmem:[%s1670_s14 + $0xe0] sm:$0xff]  ;;  %v423_v36 = vld [vmem:[%s1670_s14 + $0xf0] sm:$0xff] }
  0x7e   : > { %490 = vmatpush1.msra.mxu0 %v433_v23  ;;  %561 = vmatpush1.msra.mxu1 %v435_v24  ;;  %v418_v37 = vld [vmem:[%s1670_s14 + $0xc8] sm:$0xff]  ;;  %v420_v38 = vld [vmem:[%s1670_s14 + $0xd8] sm:$0xff]  ;;  %v417_v39 = vld [vmem:[%s1670_s14 + $0xc0] sm:$0xff] }
  0x7f   : > { %491 = vmatprep.subr.mxu0 %v430_v25  ;;  %562 = vmatprep.subr.mxu1 %v432_v26  ;;  %v419_v40 = vld [vmem:[%s1670_s14 + $0xd0] sm:$0xff]  ;;  %v414_v41 = vld [vmem:[%s1670_s14 + $0xa8] sm:$0xff]  ;;  %v416_v42 = vld [vmem:[%s1670_s14 + $0xb8] sm:$0xff] }
  0x80   : > { %492 = vmatpush1.msra.mxu0 %v429_v27  ;;  %563 = vmatpush1.msra.mxu1 %v431_v28  ;;  %v413_v43 = vld [vmem:[%s1670_s14 + $0xa0] sm:$0xff]  ;;  %v415_v44 = vld [vmem:[%s1670_s14 + $0xb0] sm:$0xff]  ;;  %v410_v45 = vld [vmem:[%s1670_s14 + $0x88] sm:$0xff] }
  0x81   : > { %493 = vmatprep.subr.mxu0 %v426_v29  ;;  %564 = vmatprep.subr.mxu1 %v428_v30  ;;  %v412_v46 = vld [vmem:[%s1670_s14 + $0x98] sm:$0xff]  ;;  %v409_v47 = vld [vmem:[%s1670_s14 + $0x80] sm:$0xff]  ;;  %v411_v48 = vld [vmem:[%s1670_s14 + $0x90] sm:$0xff] }
  0x82   : > { %494 = vmatpush1.msra.mxu0 %v425_v31  ;;  %565 = vmatpush1.msra.mxu1 %v427_v32  ;;  %v406_v49 = vld [vmem:[%s1670_s14 + $0x68] sm:$0xff]  ;;  %v408_v50 = vld [vmem:[%s1670_s14 + $0x78] sm:$0xff]  ;;  %v405_v51 = vld [vmem:[%s1670_s14 + $0x60] sm:$0xff] }
  0x83   : > { %495 = vmatprep.subr.mxu0 %v422_v33  ;;  %566 = vmatprep.subr.mxu1 %v424_v34  ;;  %v407_v52 = vld [vmem:[%s1670_s14 + $0x70] sm:$0xff]  ;;  %v402_v53 = vld [vmem:[%s1670_s14 + $0x48] sm:$0xff]  ;;  %v404_v54 = vld [vmem:[%s1670_s14 + $0x58] sm:$0xff] }
  0x84   : > { %496 = vmatpush1.msra.mxu0 %v421_v35  ;;  %567 = vmatpush1.msra.mxu1 %v423_v36  ;;  %v401_v55 = vld [vmem:[%s1670_s14 + $0x40] sm:$0xff]  ;;  %v403_v56 = vld [vmem:[%s1670_s14 + $0x50] sm:$0xff]  ;;  %v398_v57 = vld [vmem:[%s1670_s14 + $0x28] sm:$0xff] }
  0x85   : > { %497 = vmatprep.subr.mxu0 %v418_v37  ;;  %568 = vmatprep.subr.mxu1 %v420_v38  ;;  %v400_v58 = vld [vmem:[%s1670_s14 + $0x38] sm:$0xff]  ;;  %v397_v59 = vld [vmem:[%s1670_s14 + $0x20] sm:$0xff]  ;;  %v399_v60 = vld [vmem:[%s1670_s14 + $0x30] sm:$0xff] }
  0x86   : > { %498 = vmatpush1.msra.mxu0 %v417_v39  ;;  %569 = vmatpush1.msra.mxu1 %v419_v40  ;;  %v394_v61 = vld [vmem:[%s1670_s14 + $0x8] sm:$0xff]  ;;  %v396_v62 = vld [vmem:[%s1670_s14 + $0x18] sm:$0xff]  ;;  %v393_v63 = vld [vmem:[%s1670_s14] sm:$0xff] }
  0x87   : > { %499 = vmatprep.subr.mxu0 %v414_v41  ;;  %570 = vmatprep.subr.mxu1 %v416_v42  ;;  %v395_v0 = vld [vmem:[%s1670_s14 + $0x10] sm:$0xff]  ;;  %v392_v1 = vld [vmem:[#allocation3] sm:$0xff]  ;;  %v661_v3 = vld [vmem:[%s1680_s30 + $0xf8] sm:$0xff] }
  0x88   : > { %500 = vmatpush1.msra.mxu0 %v413_v43  ;;  %571 = vmatpush1.msra.mxu1 %v415_v44  ;;  %v693_v4 = vld [vmem:[%s1680_s30 + $0x1f8] sm:$0xff]  ;;  %v660_v7 = vld [vmem:[%s1680_s30 + $0xf0] sm:$0xff]  ;;  %v659_v11 = vld [vmem:[%s1680_s30 + $0xe8] sm:$0xff] }
  0x89   : > { %501 = vmatprep.subr.mxu0 %v410_v45  ;;  %572 = vmatprep.subr.mxu1 %v412_v46  ;;  %v645_v5 = vld [vmem:[%s1680_s30 + $0x78] sm:$0xff]  ;;  %v692_v8 = vld [vmem:[%s1680_s30 + $0x1f0] sm:$0xff]  ;;  %v691_v12 = vld [vmem:[%s1680_s30 + $0x1e8] sm:$0xff] }
  0x8a   : > { %502 = vmatpush1.msra.mxu0 %v409_v47  ;;  %573 = vmatpush1.msra.mxu1 %v411_v48  ;;  %v677_v6 = vld [vmem:[%s1680_s30 + $0x178] sm:$0xff]  ;;  %v644_v9 = vld [vmem:[%s1680_s30 + $0x70] sm:$0xff]  ;;  %v643_v13 = vld [vmem:[%s1680_s30 + $0x68] sm:$0xff] }
  0x8b   : > { %503 = vmatprep.subr.mxu0 %v406_v49  ;;  %574 = vmatprep.subr.mxu1 %v408_v50  ;;  %v676_v10 = vld [vmem:[%s1680_s30 + $0x170] sm:$0xff]  ;;  %v675_v14 = vld [vmem:[%s1680_s30 + $0x168] sm:$0xff]  ;;  %v658_v15 = vld [vmem:[%s1680_s30 + $0xe0] sm:$0xff] }
  0x8c   : > { %504 = vmatpush1.msra.mxu0 %v405_v51  ;;  %575 = vmatpush1.msra.mxu1 %v407_v52  ;;  %v690_v16 = vld [vmem:[%s1680_s30 + $0x1e0] sm:$0xff]  ;;  %v657_v19 = vld [vmem:[%s1680_s30 + $0xd8] sm:$0xff]  ;;  %v656_v23 = vld [vmem:[%s1680_s30 + $0xd0] sm:$0xff] }
  0x8d   : > { %505 = vmatprep.subr.mxu0 %v402_v53  ;;  %576 = vmatprep.subr.mxu1 %v404_v54  ;;  %v642_v17 = vld [vmem:[%s1680_s30 + $0x60] sm:$0xff]  ;;  %v689_v20 = vld [vmem:[%s1680_s30 + $0x1d8] sm:$0xff]  ;;  %v688_v24 = vld [vmem:[%s1680_s30 + $0x1d0] sm:$0xff] }
  0x8e   : > { %506 = vmatpush1.msra.mxu0 %v401_v55  ;;  %577 = vmatpush1.msra.mxu1 %v403_v56  ;;  %v674_v18 = vld [vmem:[%s1680_s30 + $0x160] sm:$0xff]  ;;  %v641_v21 = vld [vmem:[%s1680_s30 + $0x58] sm:$0xff]  ;;  %v640_v25 = vld [vmem:[%s1680_s30 + $0x50] sm:$0xff] }
  0x8f   : > { %507 = vmatprep.subr.mxu0 %v398_v57  ;;  %578 = vmatprep.subr.mxu1 %v400_v58  ;;  %v673_v22 = vld [vmem:[%s1680_s30 + $0x158] sm:$0xff]  ;;  %v672_v26 = vld [vmem:[%s1680_s30 + $0x150] sm:$0xff]  ;;  %v655_v27 = vld [vmem:[%s1680_s30 + $0xc8] sm:$0xff] }
  0x90   : > { %508 = vmatpush1.msra.mxu0 %v397_v59  ;;  %579 = vmatpush1.msra.mxu1 %v399_v60  ;;  %v687_v28 = vld [vmem:[%s1680_s30 + $0x1c8] sm:$0xff]  ;;  %v654_v31 = vld [vmem:[%s1680_s30 + $0xc0] sm:$0xff]  ;;  %v653_v35 = vld [vmem:[%s1680_s30 + $0xb8] sm:$0xff] }
  0x91   : > { %509 = vmatprep.subr.mxu0 %v394_v61  ;;  %580 = vmatprep.subr.mxu1 %v396_v62  ;;  %v639_v29 = vld [vmem:[%s1680_s30 + $0x48] sm:$0xff]  ;;  %v686_v32 = vld [vmem:[%s1680_s30 + $0x1c0] sm:$0xff]  ;;  %v685_v36 = vld [vmem:[%s1680_s30 + $0x1b8] sm:$0xff] }
  0x92   : > { %510 = vmatpush1.msra.mxu0 %v393_v63  ;;  %543 = vmatprep.mubr.f32.mxu0 %v1472_v2  ;;  %v671_v30 = vld [vmem:[%s1680_s30 + $0x148] sm:$0xff]  ;;  %v638_v33 = vld [vmem:[%s1680_s30 + $0x40] sm:$0xff]  ;;  %v637_v37 = vld [vmem:[%s1680_s30 + $0x38] sm:$0xff] }
  0x93   : > { %581 = vmatpush1.msra.mxu1 %v395_v0  ;;  %614 = vmatprep.mubr.f32.mxu1 %v1472_v2  ;;  %v670_v34 = vld [vmem:[%s1680_s30 + $0x140] sm:$0xff]  ;;  %v669_v38 = vld [vmem:[%s1680_s30 + $0x138] sm:$0xff]  ;;  %v652_v39 = vld [vmem:[%s1680_s30 + $0xb0] sm:$0xff] }
  0x94   : > { %544 = vmatmul.mubr.f32.vlgmr.msra.gmra.mxu0 %v392_v1  ;;  %615 = vmatmul.mubr.f32.vlgmr.msra.gmra.mxu1 %v392_v1  ;;  %v684_v40 = vld [vmem:[%s1680_s30 + $0x1b0] sm:$0xff]  ;;  %v651_v43 = vld [vmem:[%s1680_s30 + $0xa8] sm:$0xff]  ;;  %v650_v47 = vld [vmem:[%s1680_s30 + $0xa0] sm:$0xff] }
  0x95   : > { %1067 = vmatprep.subr.mxu0 %v661_v3  ;;  %1102 = vmatprep.subr.mxu1 %v693_v4  ;;  %v636_v41 = vld [vmem:[%s1680_s30 + $0x30] sm:$0xff]  ;;  %v683_v44 = vld [vmem:[%s1680_s30 + $0x1a8] sm:$0xff]  ;;  %v682_v48 = vld [vmem:[%s1680_s30 + $0x1a0] sm:$0xff]  ;;  %v459_v3 = vlaneseq }
  0x96   : > { %1068 = vmatpush3.msra.mxu0 %v645_v5  ;;  %1103 = vmatpush3.msra.mxu1 %v677_v6  ;;  %v668_v42 = vld [vmem:[%s1680_s30 + $0x130] sm:$0xff]  ;;  %v635_v45 = vld [vmem:[%s1680_s30 + $0x28] sm:$0xff]  ;;  %v634_v49 = vld [vmem:[%s1680_s30 + $0x20] sm:$0xff] }
  0x97   : > { %1069 = vmatprep.subr.mxu0 %v660_v7  ;;  %1104 = vmatprep.subr.mxu1 %v692_v8  ;;  %v667_v46 = vld [vmem:[%s1680_s30 + $0x128] sm:$0xff]  ;;  %v666_v50 = vld [vmem:[%s1680_s30 + $0x120] sm:$0xff]  ;;  %v649_v51 = vld [vmem:[%s1680_s30 + $0x98] sm:$0xff]  ;;  %v460_v4 = vshrl.u32 %v459_v3, 7 }
  0x98   : > { %1070 = vmatpush3.msra.mxu0 %v644_v9  ;;  %1105 = vmatpush3.msra.mxu1 %v676_v10  ;;  %v681_v52 = vld [vmem:[%s1680_s30 + $0x198] sm:$0xff]  ;;  %v648_v55 = vld [vmem:[%s1680_s30 + $0x90] sm:$0xff]  ;;  %v647_v59 = vld [vmem:[%s1680_s30 + $0x88] sm:$0xff] }
  0x99   : > { %1071 = vmatprep.subr.mxu0 %v659_v11  ;;  %1106 = vmatprep.subr.mxu1 %v691_v12  ;;  %v633_v53 = vld [vmem:[%s1680_s30 + $0x18] sm:$0xff]  ;;  %v680_v56 = vld [vmem:[%s1680_s30 + $0x190] sm:$0xff]  ;;  %v679_v60 = vld [vmem:[%s1680_s30 + $0x188] sm:$0xff]  ;;  %v461_v5 = vsub.s32 0, %v460_v4  ;;  %v469_v6 = vsub.s32 2, %v460_v4  ;;  %v465_v8 = vsub.s32 1, %v460_v4 }
  0x9a   : > { %1072 = vmatpush3.msra.mxu0 %v643_v13  ;;  %1107 = vmatpush3.msra.mxu1 %v675_v14  ;;  %v665_v54 = vld [vmem:[%s1680_s30 + $0x118] sm:$0xff]  ;;  %v632_v57 = vld [vmem:[%s1680_s30 + $0x10] sm:$0xff]  ;;  %v631_v61 = vld [vmem:[%s1680_s30 + $0x8] sm:$0xff]  ;;  %v473_v9 = vsub.s32 3, %v460_v4 }
  0x9b   : > { %1073 = vmatprep.subr.mxu0 %v658_v15  ;;  %1108 = vmatprep.subr.mxu1 %v690_v16  ;;  %v664_v58 = vld [vmem:[%s1680_s30 + $0x110] sm:$0xff]  ;;  %v663_v62 = vld [vmem:[%s1680_s30 + $0x108] sm:$0xff]  ;;  %v646_v63 = vld [vmem:[%s1680_s30 + $0x80] sm:$0xff] }
  0x9c   : > { %1074 = vmatpush3.msra.mxu0 %v642_v17  ;;  %1109 = vmatpush3.msra.mxu1 %v674_v18  ;;  %v678_v0 = vld [vmem:[%s1680_s30 + $0x180] sm:$0xff]  ;;  %v457_v7 = vld [vmem:[%s1677_s18] sm:$0xf] }
  0x9d   : > { %1075 = vmatprep.subr.mxu0 %v657_v19  ;;  %1110 = vmatprep.subr.mxu1 %v689_v20  ;;  %v630_v1 = vld [vmem:[%s1680_s30] sm:$0xff]  ;;  %v462_v10 = vrot.slane %v457_v7, %v461_v5  ;;  %v470_v11 = vrot.slane %v457_v7, %v469_v6  ;;  %v466_v12 = vrot.slane %v457_v7, %v465_v8 }
  0x9e   : > { %1076 = vmatpush3.msra.mxu0 %v641_v21  ;;  %1111 = vmatpush3.msra.mxu1 %v673_v22  ;;  %v662_v2 = vld [vmem:[%s1680_s30 + $0x100] sm:$0xff]  ;;  %v474_v13 = vrot.slane %v457_v7, %v473_v9 }
  0x9f   : > { %1077 = vmatprep.subr.mxu0 %v656_v23  ;;  %1112 = vmatprep.subr.mxu1 %v688_v24 }
  0xa0   : > { %1078 = vmatpush3.msra.mxu0 %v640_v25  ;;  %1113 = vmatpush3.msra.mxu1 %v672_v26 }
  0xa1   : > { %1079 = vmatprep.subr.mxu0 %v655_v27  ;;  %1114 = vmatprep.subr.mxu1 %v687_v28 }
  0xa2   : > { %1080 = vmatpush3.msra.mxu0 %v639_v29  ;;  %1115 = vmatpush3.msra.mxu1 %v671_v30 }
  0xa3   : > { %1081 = vmatprep.subr.mxu0 %v654_v31  ;;  %1116 = vmatprep.subr.mxu1 %v686_v32  ;;  %v629_v32 = vld [vmem:[#allocation2] sm:$0xff] }
  0xa4   : > { %1082 = vmatpush3.msra.mxu0 %v638_v33  ;;  %1117 = vmatpush3.msra.mxu1 %v670_v34 }
  0xa5   : > { %1083 = vmatprep.subr.mxu0 %v653_v35  ;;  %1118 = vmatprep.subr.mxu1 %v685_v36 }
  0xa6   : > { %1084 = vmatpush3.msra.mxu0 %v637_v37  ;;  %1119 = vmatpush3.msra.mxu1 %v669_v38 }
  0xa7   : > { %1085 = vmatprep.subr.mxu0 %v652_v39  ;;  %1120 = vmatprep.subr.mxu1 %v684_v40 }
  0xa8   : > { %1086 = vmatpush3.msra.mxu0 %v636_v41  ;;  %1121 = vmatpush3.msra.mxu1 %v668_v42 }
  0xa9   : > { %1087 = vmatprep.subr.mxu0 %v651_v43  ;;  %1122 = vmatprep.subr.mxu1 %v683_v44 }
  0xaa   : > { %1088 = vmatpush3.msra.mxu0 %v635_v45  ;;  %1123 = vmatpush3.msra.mxu1 %v667_v46 }
  0xab   : > { %1089 = vmatprep.subr.mxu0 %v650_v47  ;;  %1124 = vmatprep.subr.mxu1 %v682_v48 }
  0xac   : > { %1090 = vmatpush3.msra.mxu0 %v634_v49  ;;  %1125 = vmatpush3.msra.mxu1 %v666_v50 }
  0xad   : > { %1091 = vmatprep.subr.mxu0 %v649_v51  ;;  %1126 = vmatprep.subr.mxu1 %v681_v52 }
  0xae   : > { %1092 = vmatpush3.msra.mxu0 %v633_v53  ;;  %1127 = vmatpush3.msra.mxu1 %v665_v54 }
  0xaf   : > { %1093 = vmatprep.subr.mxu0 %v648_v55  ;;  %1128 = vmatprep.subr.mxu1 %v680_v56 }
  0xb0   : > { %1094 = vmatpush3.msra.mxu0 %v632_v57  ;;  %1129 = vmatpush3.msra.mxu1 %v664_v58 }
  0xb1   : > { %1095 = vmatprep.subr.mxu0 %v647_v59  ;;  %1130 = vmatprep.subr.mxu1 %v679_v60 }
  0xb2   : > { %1096 = vmatpush3.msra.mxu0 %v631_v61  ;;  %1131 = vmatpush3.msra.mxu1 %v663_v62 }
  0xb3   : > { %1097 = vmatprep.subr.mxu0 %v646_v63  ;;  %1132 = vmatprep.subr.mxu1 %v678_v0 }
  0xb4   : > { %1098 = vmatpush3.msra.mxu0 %v630_v1  ;;  %1133 = vmatpush3.msra.mxu1 %v662_v2 }
 0x154   : > { %v545_v14 = vpop.f32.mrf.mxu0  ;;  %v616_v15 = vpop.f32.mrf.mxu1 }
 0x155   : > { %v546_v16 = vadd.f32 %v545_v14, %v462_v10  ;;  %v617_v17 = vadd.f32 %v616_v15, %v470_v11 }
 0x156   : > { %v547_v18 = vpop.f32.mrf.mxu0  ;;  %v618_v19 = vpop.f32.mrf.mxu1 }
 0x157   : > { %v621_v20 = vmax.f32 %v546_v16, 0.0  ;;  %v623_v21 = vmax.f32 %v617_v17, 0.0  ;;  %v548_v22 = vadd.f32 %v547_v18, %v466_v12  ;;  %v619_v23 = vadd.f32 %v618_v19, %v474_v13 }
 0x159   : > { %625 = vst [vmem:[%s1687_s12] sm:$0xff] %v621_v20  ;;  %627 = vst [vmem:[%s1687_s12 + $0x10] sm:$0xff] %v623_v21  ;;  %v622_v24 = vmax.f32 %v548_v22, 0.0  ;;  %v624_v25 = vmax.f32 %v619_v23, 0.0 }
 0x15b   : > { %626 = vst [vmem:[%s1687_s12 + $0x8] sm:$0xff] %v622_v24  ;;  %628 = vst [vmem:[%s1687_s12 + $0x18] sm:$0xff] %v624_v25  ;;  %758 = vmatprep.mubr.f32.mxu0 %v622_v24  ;;  %828 = vmatprep.mubr.f32.mxu1 %v624_v25 }
 0x15c   : > { %759 = vmatmul.mubr.f32.vlgmr.msra.gmra.mxu0 %v621_v20  ;;  %829 = vmatmul.mubr.f32.vlgmr.msra.gmra.mxu1 %v623_v21 }
 0x21c   : > { %v1099_v26 = vpop.f32.mrf.mxu0  ;;  %v1134_v27 = vpop.f32.mrf.mxu1 }
 0x21e   : > { %v1100_v28 = vpop.f32.mrf.mxu0  ;;  %v1135_v29 = vpop.f32.mrf.mxu1 }
 0x21f   : > { %v1101_v30 = vadd.f32 %v1100_v28, %v1099_v26  ;;  %v1136_v31 = vadd.f32 %v1135_v29, %v1134_v27 }
 0x221   : > { %v831_v33 = vadd.f32 %v1136_v31, %v1101_v30  ;;  %839 = sbr.rel (%p1054_p4) target bundleno = 560 (0x230), region = 64 }
 0x223   : > { %v834_v34 = vadd.f32 %v831_v33, %v629_v32 }
 0x225   : > { %835 = vst [vmem:[#allocation2] sm:$0xff] %v834_v34 }
 0x226   : > { %v1055_v36 = vld [vmem:[%s1882_s4] ss:$0 sm:$0xff] }
 0x22c   : > { %v840_v35 = vld [vmem:[#allocation2] sm:$0xff] }
 0x22d   : > { %v848_v37 = vadd.f32 %v1055_v36, %v840_v35 }
 0x22f   : > { %849 = vst [vmem:[#allocation11] sm:$0xff] %v848_v37 }
 0x230 PF: > { %s1473_s20 = smov [#allocation11]   ;;  %s1066_s28 = sshll.u32 %s1452_s24, 9 }
 0x231   : > { %s864_s10 = sshll.u32 %s1473_s20, 4  ;;  %p1911_p7 = scmp.eq.s32.totalorder %s1582_s11, 3  ;;  %s865_s10 = int_to_ptr.vmem [resolvable:$true] %s864_s10 }
 0x232   : > { %s1344_s23 = scalar_lea.vmem %s865_s10, 128  ;;  %p1351_p10 = scmp.lt.s32.totalorder %s865_s10, %s865_s10 }
 0x233   : > { %p1345_p11 = scmp.ne.s32.totalorder %s865_s10, %s1344_s23  ;;  %p1352_p0 = scmp.lt.s32.totalorder %s1344_s23, %s1344_s23 }
 0x235   : > { %p1346_p3 = pnand %p1345_p11, %p1911_p7  ;;  %p1353_p9 = por %p1352_p0, %p1351_p10 }
 0x237   : > { %p1347_p8 = pneg %p1346_p3 }
 0x239   : > { %p1354_p12 = pnand %p1353_p9, %p1347_p8 }
 0x23b   : > { %1357 = shalt.err (!%p1354_p12)
}
 0x23c   : > { %p1912_p1 = pmov %p1911_p7  ;;  %s878_s16 = scalar_lea.hbm %s1884_s6, %s1066_s28 }
 0x23d   : > { %s880_s14 = sshll.u32 %s1687_s12, 4  ;;  %s851_s19 = scalar_lea.sflag [#allocation13], %s1667_s1  ;;  %s881_s14 = int_to_ptr.vmem [resolvable:$true] %s880_s14 }
 0x23e   : > { %1148 = dma.vmem_to_hbm [thread:$0]  (%p1912_p1), %s865_s10, 128, %s1883_s5, [#allocation5]  }
 0x23f   : > { %s1368_s18 = scalar_lea.vmem %s881_s14, 512  ;;  %p1913_p5 = scmp.ne.s32.totalorder %s1901_s13, 0 }
 0x240   : > { %p1369_p2 = scmp.ne.s32.totalorder %s881_s14, %s1368_s18  ;;  %s1474_s29 = smov [#allocation12]  }
 0x241   : > { %s1372_s30 = sshll.u32 %s1474_s29, 4  ;;  %s1373_s30 = int_to_ptr.vmem [resolvable:$false] %s1372_s30 }
 0x242   : > { %p1370_p6 = pnand %p1369_p2, %p1913_p5  ;;  %s1374_s8 = scalar_lea.vmem %s1373_s30, 1024 }
 0x243   : > { %p1375_p4 = scmp.lt.s32.totalorder %s881_s14, %s1373_s30  ;;  %p1376_p11 = scmp.lt.s32.totalorder %s1374_s8, %s1368_s18 }
 0x244   : > { %p1371_p13 = pneg %p1370_p6 }
 0x245   : > { %p1377_p7 = por %p1376_p11, %p1375_p4 }
 0x247   : > { %p1378_p3 = pnand %p1377_p7, %p1371_p13 }
 0x249   : > { %1381 = shalt.err (!%p1378_p3)
}
 0x24a   : > { %s1382_s15 = scalar_lea.hbm %s878_s16, 512  ;;  %s1386_s27 = scalar_lea.hbm %s1884_s6, 2048 }
 0x24b   : > { %p1383_p8 = scmp.ne.s32.totalorder %s878_s16, %s1382_s15  ;;  %p1387_p9 = scmp.lt.s32.totalorder %s878_s16, %s1884_s6 }
 0x24c   : > { %p1388_p12 = scmp.lt.s32.totalorder %s1386_s27, %s1382_s15 }
 0x24d   : > { %p1384_p10 = pnand %p1383_p8, %p1913_p5 }
 0x24e   : > { %p1389_p1 = por %p1388_p12, %p1387_p9 }
 0x24f   : > { %p1385_p0 = pneg %p1384_p10 }
 0x251   : > { %p1390_p2 = pnand %p1389_p1, %p1385_p0 }
 0x253   : > { %1393 = shalt.err (!%p1390_p2)
}
 0x254   : > { %1149 = dma.vmem_to_hbm [thread:$0]  (%p1913_p5), %s881_s14, 512, %s878_s16, %s851_s19  }
 0x255   : > { %p1914_p6 = scmp.eq.s32.totalorder %s1582_s11, 3 }
 0x257   : > { %1431 = dma.done.wait (%p1914_p6), [#allocation5], 128   ;;  %p1915_p13 = pmov %p1914_p6 }
 0x259   : > { %1433 = vsyncadd (%p1915_p13), [#allocation5], 4294967168 }
 0x25a PF: > { %s1916_s28 = sld [smem:[#allocation22_spill]]  ;;  %p1176_p4 = scmp.ge.s32.totalorder %s1460_s26, 2 }
 0x25b   : > { %s896_s23 = sand.u32 1, %s1440_s21  }
 0x25c   : > { %s897_s9 = scalar_lea.sflag [#allocation13], %s896_s23 }
 0x260   : > { %p1917_p11 = scmp.ne.s32.totalorder %s1916_s28, 0 }
 0x262   : > { %p1168_p7 = pnand %p1176_p4, %p1917_p11 }
 0x264   : > { %p1169_p3 = pneg %p1168_p7 }
 0x266   : > { %1435 = dma.done.wait (%p1169_p3), %s897_s9, 512  }
 0x267   : > { %1437 = vsyncadd (%p1169_p3), %s897_s9, 4294966784  ;;  %s28_s26 = sadd.s32 1, %s1460_s26   ;;  %s1918_s13 = sld [smem:[#allocation19_spill]] }
 0x268   : > { %p25_p5 = scmp.ge.s32.totalorder %s28_s26, 6   ;;  %s1919_s23 = sld [smem:[#allocation21_spill]] }
 0x269   : > { %s1920_s11 = sld [smem:[#allocation20_spill]]  ;;  %s1921_s21 = smov %s1444_s22 }
 0x26a   : > { %s1923_s24 = smov %s1456_s25 }
 0x26b   :  { %27 = sbr.rel (!%p25_p5) target bundleno = 12 (0xc), region = 133 }
 0x26d   : > { %s1922_s22 = smov %s1918_s13 }
 0x26f   : > { %s1924_s25 = smov %s1920_s11 }
 0x270   :  { %902 = vsyncpa [#allocation4], 1 }
 0x271   :  { %904 = vsyncpa [#allocation4 + $0x1], 1 }
 0x272   :  { %905 = vsyncpa [#allocation7], 1 }
 0x273   :  { %907 = vsyncpa [#allocation7 + $0x1], 1 }
 0x274   :  { %908 = vsyncpa [#allocation10], 1 }
 0x275   :  { %910 = vsyncpa [#allocation10 + $0x1], 1 }
 0x276   :  { %911 = vsyncpa [#allocation5], 1 }
 0x277   :  { %913 = vsyncpa [#allocation5 + $0x1], 1 }
 0x278   :  { %914 = vsyncpa [#allocation13], 1 }
 0x279   :  { %916 = vsyncpa [#allocation13 + $0x1], 1 }

</bundles_post_ra>
